<compile_context>
chip_gen: v7x
topology: tpu7x:2x2x1
jax: 0.10.0
libtpu: 0.0.40
codegen_flags: <defaults>
</compile_context>

<pallas_src>
import functools
import math

import jax
import jax.numpy as jnp
from jax.experimental import pallas as pl
from jax.experimental.pallas import tpu as pltpu

ACT_DTYPE = jnp.bfloat16


def _round_up(x, m):
    return (x + m - 1) // m * m


def _largest_divisor(n, cap, mult=8):
    """Largest divisor of n that is <= cap and a multiple of `mult` (or None)."""
    cap = min(cap, n)
    d = (cap // mult) * mult
    while d >= mult:
        if n % d == 0:
            return d
        d -= mult
    return None


def _detect_chip():
    try:
        kind = jax.devices()[0].device_kind.lower()
    except Exception:
        kind = ""
    is_v7 = "v7" in kind
    if is_v7:
        vmem = 40 * 1024 * 1024            # 64 MiB physical VMEM -> leave headroom
    elif any(t in kind for t in ("v6", "v5", "v4")):
        vmem = 64 * 1024 * 1024            # 128 MiB physical VMEM
    else:
        vmem = 32 * 1024 * 1024
    return is_v7, vmem


_IS_V7, _VMEM_LIMIT = _detect_chip()
_K_CHUNK_CAP = 4608 if _VMEM_LIMIT >= 48 * 1024 * 1024 else 2304


# ----------------------------------------------------------------------------------
# Pallas kernels
# ----------------------------------------------------------------------------------

def _mm_kernel_single(relu, has_res, a_ref, b_ref, c_ref, *rest):
    """Single-K-chunk bf16 matmul: no scratch, direct +bias [+res] [ReLU] store."""
    if has_res:
        r_ref, o_ref = rest
    else:
        (o_ref,) = rest
        r_ref = None
    y = jnp.dot(a_ref[...], b_ref[...], preferred_element_type=jnp.float32)
    y = y + c_ref[...]
    if r_ref is not None:
        y = y + r_ref[...].astype(jnp.float32)
    if relu:
        y = jnp.maximum(y, 0.0)
    o_ref[...] = y.astype(o_ref.dtype)


def _mm_kernel_multi(relu, has_res, a_ref, b_ref, c_ref, *rest):
    """Multi-K-chunk bf16 matmul with fp32 scratch accumulator."""
    if has_res:
        r_ref, o_ref, acc_ref = rest
    else:
        o_ref, acc_ref = rest
        r_ref = None
    k = pl.program_id(2)

    @pl.when(k == 0)
    def _():
        acc_ref[...] = jnp.zeros_like(acc_ref)

    acc_ref[...] += jnp.dot(a_ref[...], b_ref[...],
                            preferred_element_type=jnp.float32)

    @pl.when(k == pl.num_programs(2) - 1)
    def _():
        y = acc_ref[...] + c_ref[...]
        if r_ref is not None:
            y = y + r_ref[...].astype(jnp.float32)
        if relu:
            y = jnp.maximum(y, 0.0)
        o_ref[...] = y.astype(o_ref.dtype)


def _fused_conv3_kernel(relu, Ho, Wo, x_ref, w_ref, b_ref, o_ref):
    """3x3 stride-1 conv, fused patch gather: 9 shifted matmuls over a VMEM-resident
    padded image block.  x_ref:(1,Ho+2,Wo+2,Cin) w_ref:(3,3,Cin,tn) b_ref:(1,tn)."""
    cin = x_ref.shape[3]
    tn = w_ref.shape[3]
    xv = x_ref[0]                                       # (Ho+2, Wo+2, Cin)
    acc = None
    for di in range(3):
        for dj in range(3):
            patch = xv[di:di + Ho, dj:dj + Wo, :]       # contiguous static slices
            a = patch.reshape(Ho * Wo, cin)
            d = jnp.dot(a, w_ref[di, dj], preferred_element_type=jnp.float32)
            acc = d if acc is None else acc + d
    y = acc + b_ref[...]
    if relu:
        y = jnp.maximum(y, 0.0)
    o_ref[0] = y.reshape(Ho, Wo, tn).astype(o_ref.dtype)


def _maxpool_phase_kernel(Ho, Wo, p00_ref, p01_ref, p10_ref, p11_ref, o_ref):
    """3x3/s2/p1 max-pool from 4 even/odd phases of the padded input (read once)."""
    taps = (
        p00_ref[0, pl.ds(0, Ho), pl.ds(0, Wo), :],
        p01_ref[0, pl.ds(0, Ho), pl.ds(0, Wo), :],
        p00_ref[0, pl.ds(0, Ho), pl.ds(1, Wo), :],
        p10_ref[0, pl.ds(0, Ho), pl.ds(0, Wo), :],
        p11_ref[0, pl.ds(0, Ho), pl.ds(0, Wo), :],
        p10_ref[0, pl.ds(0, Ho), pl.ds(1, Wo), :],
        p00_ref[0, pl.ds(1, Ho), pl.ds(0, Wo), :],
        p01_ref[0, pl.ds(1, Ho), pl.ds(0, Wo), :],
        p00_ref[0, pl.ds(1, Ho), pl.ds(1, Wo), :],
    )
    m = taps[0]
    for t in taps[1:]:
        m = jnp.maximum(m, t)
    o_ref[0] = m


def _avgpool_kernel(inv_hw, x_ref, o_ref):
    # x_ref: (1, HW, C) bf16; o_ref: (1, 1, C) f32
    s = jnp.sum(x_ref[0].astype(jnp.float32), axis=0, keepdims=True)
    o_ref[0] = s * inv_hw


# ----------------------------------------------------------------------------------
# Matmul wrapper (tile selection + pallas_call)
# ----------------------------------------------------------------------------------

def _choose_tiles(M, K, N):
    # M tile: full when small, else a divisor (<=512, mult of 8); cdiv handles the rest.
    if M <= 512:
        tm = M
    else:
        tm = _largest_divisor(M, 512, 8) or 512
    # K: single full-K chunk when it fits, else equal 128-multiple chunks.
    if K <= _K_CHUNK_CAP:
        tk = K
    else:
        tk = None
        for ns in range(2, 65):
            if K % ns == 0 and (K // ns) % 128 == 0 and (K // ns) <= _K_CHUNK_CAP:
                tk = K // ns
                break
        if tk is None:
            tk = K  # robustness fallback (never hit by ResNet-101 shapes)
    # N (output channels).
    tn = 512 if (N >= 512 and N % 512 == 0) else N
    # Only v7x has 2 TensorCores; keep >=2 blocks on a parallel axis there.
    if _IS_V7 and pl.cdiv(M, tm) == 1 and N // tn == 1 and tn >= 256 and tn % 256 == 0:
        tn //= 2
    return tm, tk, tn


def _matmul_bias_act(a, b, bias, res=None, *, relu):
    """a:(M,K) bf16 @ b:(K,N) bf16 + bias:(1,N) f32 [+ res:(M,N)] [ReLU] -> (M,N) bf16."""
    M, K = a.shape
    Kb, N = b.shape
    assert K == Kb
    tm, tk, tn = _choose_tiles(M, K, N)
    gm, gn, gk = pl.cdiv(M, tm), N // tn, K // tk
    single_k = gk == 1

    in_specs = [
        pl.BlockSpec((tm, tk), lambda i, j, k: (i, k)),
        pl.BlockSpec((tk, tn), lambda i, j, k: (k, j)),
        pl.BlockSpec((1, tn), lambda i, j, k: (0, j)),
    ]
    args = [a, b, bias]
    if res is not None:
        in_specs.append(pl.BlockSpec((tm, tn), lambda i, j, k: (i, j)))
        args.append(res)

    if single_k:
        kern = functools.partial(_mm_kernel_single, relu, res is not None)
        scratch = ()
    else:
        kern = functools.partial(_mm_kernel_multi, relu, res is not None)
        scratch = (pltpu.VMEM((tm, tn), jnp.float32),)

    bytes_accessed = 2 * (M * K + K * N + M * N) + 4 * N
    if res is not None:
        bytes_accessed += 2 * M * N

    return pl.pallas_call(
        kern,
        out_shape=jax.ShapeDtypeStruct((M, N), ACT_DTYPE),
        grid_spec=pltpu.PrefetchScalarGridSpec(
            num_scalar_prefetch=0,
            grid=(gm, gn, gk),
            in_specs=in_specs,
            out_specs=pl.BlockSpec((tm, tn), lambda i, j, k: (i, j)),
            scratch_shapes=scratch,
        ),
        compiler_params=pltpu.CompilerParams(
            dimension_semantics=("parallel", "parallel", "arbitrary"),
            vmem_limit_bytes=_VMEM_LIMIT),
        cost_estimate=pl.CostEstimate(flops=2 * M * K * N,
                                      transcendentals=0,
                                      bytes_accessed=bytes_accessed),
    )(*args)


# ----------------------------------------------------------------------------------
# Fused 3x3 stride-1 conv (no im2col HBM round-trip)
# ----------------------------------------------------------------------------------

def _fused_conv3_ok(H, W, cin, cout):
    if H * W < 64:          # tiny maps: im2col path is fine and cheaper to reason about
        return False
    tn = cout if cout <= 256 else 256
    x_bytes = (H + 2) * (W + 2) * cin * 2
    w_bytes = 9 * cin * tn * 2
    o_bytes = H * W * tn * 2
    acc_bytes = H * W * tn * 4
    footprint = 4 * x_bytes + 2 * (w_bytes + o_bytes) + 2 * acc_bytes
    return footprint < int(_VMEM_LIMIT * 0.6)


def _conv3x3_fused(x, w, bias, *, relu):
    N, H, W, cin = x.shape
    cout = w.shape[3]
    Ho, Wo = H, W
    xp = jnp.pad(x, ((0, 0), (1, 1), (1, 1), (0, 0)))
    tn = cout if cout <= 256 else 256
    grid = (N, cout // tn)
    flops = 2 * N * Ho * Wo * 9 * cin * cout
    bytes_accessed = (2 * N * (H + 2) * (W + 2) * cin + 2 * 9 * cin * cout
                      + 2 * N * Ho * Wo * cout + 4 * cout)
    out = pl.pallas_call(
        functools.partial(_fused_conv3_kernel, relu, Ho, Wo),
        out_shape=jax.ShapeDtypeStruct((N, Ho, Wo, cout), ACT_DTYPE),
        grid_spec=pltpu.PrefetchScalarGridSpec(
            num_scalar_prefetch=0,
            grid=grid,
            in_specs=[
                pl.BlockSpec((1, Ho + 2, Wo + 2, cin), lambda n, j: (n, 0, 0, 0)),
                pl.BlockSpec((3, 3, cin, tn), lambda n, j: (0, 0, 0, j)),
                pl.BlockSpec((1, tn), lambda n, j: (0, j)),
            ],
            out_specs=pl.BlockSpec((1, Ho, Wo, tn), lambda n, j: (n, 0, 0, j)),
        ),
        compiler_params=pltpu.CompilerParams(
            dimension_semantics=("parallel", "parallel"),
            vmem_limit_bytes=_VMEM_LIMIT),
        cost_estimate=pl.CostEstimate(flops=flops, transcendentals=0,
                                      bytes_accessed=bytes_accessed),
    )(xp, w, bias)
    return out


# ----------------------------------------------------------------------------------
# Glue: im2col conv, bottleneck, max-pool, avg-pool (jit-cached per shape/config)
# ----------------------------------------------------------------------------------

def _im2col(x, kh, kw, stride, pad, k_target=None):
    N, H, W, C = x.shape
    Ho = (H + 2 * pad - kh) // stride + 1
    Wo = (W + 2 * pad - kw) // stride + 1
    if kh == 1 and kw == 1 and pad == 0:
        cols = x[:, ::stride, ::stride, :].reshape(N * Ho * Wo, C)
    else:
        xp = jnp.pad(x, ((0, 0), (pad, pad), (pad, pad), (0, 0)))
        pieces = [xp[:, i:i + stride * Ho:stride, j:j + stride * Wo:stride, :]
                  for i in range(kh) for j in range(kw)]
        if k_target is not None and k_target > kh * kw * C:
            pieces.append(jnp.zeros((N, Ho, Wo, k_target - kh * kw * C), x.dtype))
        cols = jnp.concatenate(pieces, axis=-1).reshape(N * Ho * Wo, -1)
    return cols, Ho, Wo


@functools.partial(jax.jit, static_argnames=("stride", "pad", "relu"))
def conv_bn_act(x, p, *, stride, pad, relu):
    """x:(N,H,W,Cin) bf16; p: {'w':(kh,kw,Cin,Cout) bf16 (BN folded), 'b':(1,Cout) f32}."""
    w, bias = p["w"], p["b"]
    kh, kw, cin, cout = w.shape
    N, H, W, _ = x.shape
    if (kh == 3 and kw == 3 and stride == 1 and pad == 1
            and _fused_conv3_ok(H, W, cin, cout)):
        return _conv3x3_fused(x, w, bias, relu=relu)
    wm = p.get("wm")
    if wm is None:
        wm = w.reshape(kh * kw * cin, cout)
    cols, Ho, Wo = _im2col(x, kh, kw, stride, pad, k_target=wm.shape[0])
    y = _matmul_bias_act(cols, wm, bias, relu=relu)
    return y.reshape(N, Ho, Wo, cout)


@functools.partial(jax.jit, static_argnames=("stride",))
def bottleneck(x, blk, *, stride):
    identity = x
    out = conv_bn_act(x, blk["conv1"], stride=1, pad=0, relu=True)
    out = conv_bn_act(out, blk["conv2"], stride=stride, pad=1, relu=True)
    if "downsample" in blk:
        identity = conv_bn_act(x, blk["downsample"], stride=stride, pad=0, relu=False)
    # conv3 (1x1) with BN bias, residual add and ReLU fused into the matmul epilogue.
    N, H, W, _ = out.shape
    w3 = blk["conv3"]["w"]
    cin3, cout3 = w3.shape[2], w3.shape[3]
    cols = out.reshape(N * H * W, cin3)
    res = identity.reshape(N * H * W, cout3)
    y = _matmul_bias_act(cols, w3.reshape(cin3, cout3), blk["conv3"]["b"],
                         res, relu=True)
    return y.reshape(N, H, W, cout3)


@jax.jit
def maxpool_3x3_s2_p1(x):
    N, H, W, C = x.shape
    Ho, Wo = H // 2, W // 2
    # Zero padding is exact here because the pooled tensor is post-ReLU (>= 0).
    xp = jnp.pad(x, ((0, 0), (1, 1), (1, 1), (0, 0)))
    p00 = xp[:, 0::2, 0::2, :]
    p01 = xp[:, 0::2, 1::2, :]
    p10 = xp[:, 1::2, 0::2, :]
    p11 = xp[:, 1::2, 1::2, :]
    return pl.pallas_call(
        functools.partial(_maxpool_phase_kernel, Ho, Wo),
        out_shape=jax.ShapeDtypeStruct((N, Ho, Wo, C), x.dtype),
        grid_spec=pltpu.PrefetchScalarGridSpec(
            num_scalar_prefetch=0,
            grid=(N,),
            in_specs=[pl.BlockSpec((1, Ho + 1, Wo + 1, C),
                                   lambda n: (n, 0, 0, 0)) for _ in range(4)],
            out_specs=pl.BlockSpec((1, Ho, Wo, C), lambda n: (n, 0, 0, 0)),
        ),
        compiler_params=pltpu.CompilerParams(
            dimension_semantics=("parallel",),
            vmem_limit_bytes=_VMEM_LIMIT),
    )(p00, p01, p10, p11)


@jax.jit
def global_avgpool(x):
    N, H, W, C = x.shape
    HW = H * W
    xr = x.reshape(N, HW, C)
    out = pl.pallas_call(
        functools.partial(_avgpool_kernel, 1.0 / HW),
        out_shape=jax.ShapeDtypeStruct((N, 1, C), jnp.float32),
        grid_spec=pltpu.PrefetchScalarGridSpec(
            num_scalar_prefetch=0,
            grid=(N,),
            in_specs=[pl.BlockSpec((1, HW, C), lambda n: (n, 0, 0))],
            out_specs=pl.BlockSpec((1, 1, C), lambda n: (n, 0, 0)),
        ),
        compiler_params=pltpu.CompilerParams(
            dimension_semantics=("parallel",),
            vmem_limit_bytes=_VMEM_LIMIT),
    )(xr)
    return out.reshape(N, C)


# ----------------------------------------------------------------------------------
# Parameters (deterministic synthetic init; ResNet-101 topology; BN folded, bf16)
# ----------------------------------------------------------------------------------

class ParamBank:
    def __init__(self, key):
        self._key = key

    def _next(self):
        self._key, k = jax.random.split(self._key)
        return k

    def conv_bn(self, kh, kw, cin, cout, eps=1e-5):
        fan_in = kh * kw * cin
        w = jax.random.normal(self._next(), (kh, kw, cin, cout), jnp.float32)
        w = w * (1.0 / math.sqrt(fan_in))
        gamma = 1.0 + 0.1 * jax.random.normal(self._next(), (cout,), jnp.float32)
        beta = 0.1 * jax.random.normal(self._next(), (cout,), jnp.float32)
        running_mean = jnp.zeros((cout,), jnp.float32)
        running_var = jnp.ones((cout,), jnp.float32)
        scale = gamma / jnp.sqrt(running_var + eps)
        bias = beta - running_mean * scale
        # Fold BN scale into the weights, pre-cast to bf16 once; bias stays fp32 and is
        # added in the kernel epilogue.
        w_folded = (w * scale[None, None, None, :]).astype(ACT_DTYPE)
        p = {"w": w_folded, "b": bias.reshape(1, cout).astype(jnp.float32)}
        K = kh * kw * cin
        if K % 64 != 0:  # only the 7x7 stem (K=147): pre-pad matmul weight at init.
            Kp = _round_up(K, 128)
            wm = jnp.zeros((Kp, cout), ACT_DTYPE).at[:K].set(w_folded.reshape(K, cout))
            p["wm"] = wm
        return p


def init_resnet101_params(key):
    bank = ParamBank(key)
    params = {"stem": bank.conv_bn(7, 7, 3, 64), "layers": []}
    inplanes = 64
    for planes, nblocks in zip([64, 128, 256, 512], [3, 4, 23, 3]):
        blocks = []
        for b in range(nblocks):
            blk = {
                "conv1": bank.conv_bn(1, 1, inplanes, planes),
                "conv2": bank.conv_bn(3, 3, planes, planes),
                "conv3": bank.conv_bn(1, 1, planes, planes * 4),
            }
            if b == 0:
                blk["downsample"] = bank.conv_bn(1, 1, inplanes, planes * 4)
            blocks.append(blk)
            inplanes = planes * 4
        params["layers"].append(blocks)
    return params


# ----------------------------------------------------------------------------------
# EntireImageEncoder.forward
# ----------------------------------------------------------------------------------

def entire_image_encoder_forward(params, images_nchw):
    """images_nchw: (N, 3, H, W) -> (N, 2048), matching
       self.grid_rep_extractor_entire(images).reshape(-1, 2048)."""
    x = jnp.transpose(images_nchw, (0, 2, 3, 1)).astype(ACT_DTYPE)   # NCHW -> NHWC
    # stem: conv7x7/s2 + BN + ReLU + maxpool3x3/s2
    x = conv_bn_act(x, params["stem"], stride=2, pad=3, relu=True)
    x = maxpool_3x3_s2_p1(x)
    # layer1..layer4 (bottleneck blocks: 3, 4, 23, 3)
    for stage, blocks in enumerate(params["layers"]):
        stage_stride = 1 if stage == 0 else 2
        for b, blk in enumerate(blocks):
            x = bottleneck(x, blk, stride=stage_stride if b == 0 else 1)
    feats = global_avgpool(x)                                        # (N, 2048) f32
    return feats.reshape(-1, 2048)


if __name__ == "__main__":
    key = jax.random.PRNGKey(0)
    pkey, xkey = jax.random.split(key)
    params = init_resnet101_params(pkey)
    # small input, PyTorch NCHW convention (ResNet needs 3 channels)
    images = jax.random.normal(xkey, (2, 3, 64, 64), jnp.float32)
    out = entire_image_encoder_forward(params, images)
    out = jax.block_until_ready(out)
    assert out.shape == (2, 2048), out.shape
    assert bool(jnp.all(jnp.isfinite(out)))
    print("KERNEL_OK")
</pallas_src>

<mosaic_0001>
module attributes {stable_mosaic.version = 11 : i64} {
  func.func @_mm_kernel_single(%arg0: i32, %arg1: i32, %arg2: i32, %arg3: memref<512x256xbf16, #tpu.memory_space<vmem>>, %arg4: memref<256x64xbf16, #tpu.memory_space<vmem>>, %arg5: memref<1x64xf32, #tpu.memory_space<vmem>>, %arg6: memref<512x64xbf16, #tpu.memory_space<vmem>>) attributes {dimension_semantics = [#tpu.dimension_semantics<parallel>, #tpu.dimension_semantics<parallel>, #tpu.dimension_semantics<arbitrary>], iteration_bounds = array<i64: 4, 1, 1>, scalar_prefetch = 0 : i64, scratch_operands = 0 : i64, tpu.core_type = #tpu.core_type<tc>, window_params = [{transform_indices = @transform_0, window_bounds = array<i64: 512, 256>}, {transform_indices = @transform_1, window_bounds = array<i64: 256, 64>}, {transform_indices = @transform_2, window_bounds = array<i64: 1, 64>}, {transform_indices = @transform_3, window_bounds = array<i64: 512, 64>}]} {
    %c0 = arith.constant 0 : index
    %c0_0 = arith.constant 0 : index
    %0 = vector.load %arg3[%c0, %c0_0] : memref<512x256xbf16, #tpu.memory_space<vmem>>, vector<512x256xbf16>
    %c0_1 = arith.constant 0 : index
    %c0_2 = arith.constant 0 : index
    %1 = vector.load %arg4[%c0_1, %c0_2] : memref<256x64xbf16, #tpu.memory_space<vmem>>, vector<256x64xbf16>
    %cst = arith.constant dense<0.000000e+00> : vector<512x64xf32>
    %2 = tpu.matmul %0, %1, %cst {dimension_numbers = #tpu.dot_dimension_numbers<[1], [0], [0], [1], [0, 0, 1, 1], [], []>} : vector<512x256xbf16>, vector<256x64xbf16>, vector<512x64xf32> -> vector<512x64xf32>
    %c0_3 = arith.constant 0 : index
    %c0_4 = arith.constant 0 : index
    %3 = vector.load %arg5[%c0_3, %c0_4] : memref<1x64xf32, #tpu.memory_space<vmem>>, vector<1x64xf32>
    %4 = vector.broadcast %3 : vector<1x64xf32> to vector<512x64xf32>
    %5 = arith.addf %2, %4 : vector<512x64xf32>
    %cst_5 = arith.constant 0.000000e+00 : f32
    %6 = vector.broadcast %cst_5 : f32 to vector<512x64xf32>
    %7 = arith.maximumf %5, %6 : vector<512x64xf32>
    %8 = arith.truncf %7 : vector<512x64xf32> to vector<512x64xbf16>
    %c0_6 = arith.constant 0 : index
    %c0_7 = arith.constant 0 : index
    %9 = vector.load %arg6[%c0_6, %c0_7] : memref<512x64xbf16, #tpu.memory_space<vmem>>, vector<512x64xbf16>
    tpu.vector_store %arg6[%c0_6, %c0_7], %8 {strides = array<i32>} : memref<512x64xbf16, #tpu.memory_space<vmem>>, vector<512x64xbf16>,
    return
  }
  func.func @transform_0(%arg0: i32, %arg1: i32, %arg2: i32) -> (i32, i32) {
    %c0_i32 = arith.constant 0 : i32
    return %arg0, %arg2 : i32, i32
  }
  func.func @transform_1(%arg0: i32, %arg1: i32, %arg2: i32) -> (i32, i32) {
    %c0_i32 = arith.constant 0 : i32
    return %arg2, %arg1 : i32, i32
  }
  func.func @transform_2(%arg0: i32, %arg1: i32, %arg2: i32) -> (i32, i32) {
    %c0_i32 = arith.constant 0 : i32
    %c0_i32_0 = arith.constant 0 : i32
    return %c0_i32, %arg1 : i32, i32
  }
  func.func @transform_3(%arg0: i32, %arg1: i32, %arg2: i32) -> (i32, i32) {
    %c0_i32 = arith.constant 0 : i32
    return %arg0, %arg1 : i32, i32
  }
}

</mosaic_0001>

<bundles_post_ra>
// kernel: conv_bn_act.1
= control target key start
LH: loop header
LB: loop body
LE: loop exit
PB: predicated region body
PF: predicated region fallthrough
CT: control target
= control target key end

     0   :  { %8 = vsyncpa [#allocation3], 0  ;;  %s2576_s0 = inlined_call_operand.vmem [shape: bf16[2048,256], index: 0, kind: input, shape index: {}]   ;;  %s2577_s1 = inlined_call_operand.vmem [shape: bf16[256,64], index: 1, kind: input, shape index: {}]   ;;  %s2578_s2 = inlined_call_operand.vmem [shape: f32[1,64], index: 2, kind: input, shape index: {}]   ;;  %s2579_s3 = inlined_call_operand.hbm [shape: bf16[2048,64], index: 3, kind: output, shape index: {}]  }
   0x1   :  { %10 = vsyncpa [#allocation3 + $0x1], 0  ;;  %s2112_s12 = smov 0   ;;  %s2114_s13 = smov 0  }
   0x2   :  { %s2116_s14 = smov 0   ;;  %s2118_s15 = smov 0  }
   0x3   :  { %s2120_s16 = smov 0   ;;  %s2122_s17 = smov 0  }
   0x4 LB: > { %s1579_s18 = sadd.s32 4294967295, %s2086_s17   ;;  %s1580_s19 = sadd.s32 4294967294, %s2086_s17   ;;  %s2086_s17 = sphi %s2122_s17, %s16_s17   ;;  %s2082_s16 = sphi %s2120_s16, %s2586_s16   ;;  %s2078_s15 = sphi %s2118_s15, %s2585_s15   ;;  %s2074_s14 = sphi %s2116_s14, %s2584_s14   ;;  %s2070_s13 = sphi %s2114_s13, %s2583_s13   ;;  %s2066_s12 = sphi %s2112_s12, %s2582_s12  }
   0x5   : > { %s35_s20 = sadd.s32 1, %s2082_s16  ;;  %s126_s21 = sadd.s32 1, %s2074_s14 }
   0x6   : > { %p37_p0 = scmp.ge.s32.totalorder %s35_s20, 4  ;;  %p136_p1 = scmp.ne.s32.totalorder %s2074_s14, %s2070_s13 }
   0x7   : > { %p137_p2 = scmp.eq.s32.totalorder %s1579_s18, 3  ;;  %p142_p3 = scmp.ne.s32.totalorder %s2070_s13, %s2066_s12 }
   0x8   : > { %s2588_s20 = smov (%p37_p0, %s35_s20), 0  ;;  %p143_p5 = scmp.eq.s32.totalorder %s1580_s19, 3 }
   0x9   : > { %p2152_p4 = por %p137_p2, %p136_p1  ;;  %s121_s23 = ssub.s32 %s2082_s16, %s2588_s20 }
   0xa   : > { %p1585_p6 = scmp.ge.s32.totalorder %s2086_s17, 1  ;;  %p124_p7 = scmp.eq.s32.totalorder %s121_s23, 0 }
   0xb   : > { %p2159_p8 = por %p143_p5, %p142_p3  ;;  %p194_p9 = scmp.lt.s32.totalorder %s2086_s17, 5 }
   0xc   : > { %s2165_s25 = scalar_select %p124_p7, %s2074_s14, %s126_s21  }
   0xd   : > { %p195_p10 = pnand %p1585_p6, %p194_p9 }
   0xe   : > { %v1896_v0 = vld [vmem:[%s2577_s1] sm:$0xff] (!%p195_p10)   ;;  %v2088_v1 = vmov (!%p195_p10), 0   ;;  %s1587_s28 = sshll.u32 (!%p195_p10), %s2078_s15, 6  ;;  %v1897_v2 = vld [vmem:[%s2577_s1 + $0x8] sm:$0xff] (!%p195_p10)   ;;  %v1898_v3 = vld [vmem:[%s2577_s1 + $0x10] sm:$0xff] (!%p195_p10)   ;;  %s231_s30 = sand.u32 (!%p195_p10), 1, %s2070_s13  }
   0xf   : > { %198 = sbr.rel (%p195_p10) target bundleno = 434 (0x1b2), region = 32  ;;  %779 = vmatprep.subr.bf16.mxu0 (!%p195_p10), %v2088_v1  ;;  %1806 = vmatprep.subr.bf16.mxu1 (!%p195_p10), %v2088_v1  ;;  %p236_p11 = scmp.lt.s32.totalorder (!%p195_p10), %s1587_s28, 255  ;;  %v1899_v4 = vld [vmem:[%s2577_s1 + $0x18] sm:$0xff] (!%p195_p10)   ;;  %v1900_v5 = vld [vmem:[%s2577_s1 + $0x20] sm:$0xff] (!%p195_p10)   ;;  %v1901_v7 = vld [vmem:[%s2577_s1 + $0x28] sm:$0xff] (!%p195_p10)   ;;  %vm1388_vm0 = vcmask (!%p195_p10), 519168  }
  0x10   : > { %780 = vmatpush1.bf16.msra.mxu0 (!%p195_p10), %v1896_v0  ;;  %1822 = vmatpush1.bf16.msra.mxu1 (!%p195_p10), %v1896_v0  ;;  %v1902_v9 = vld [vmem:[%s2577_s1 + $0x30] sm:$0xff] (!%p195_p10)   ;;  %v1903_v10 = vld [vmem:[%s2577_s1 + $0x38] sm:$0xff] (!%p195_p10)   ;;  %v1904_v11 = vld [vmem:[%s2577_s1 + $0x40] sm:$0xff] (!%p195_p10)   ;;  %s1586_s6 = sshll.u32 (!%p195_p10), %s231_s30, 8  ;;  %s1805_s7 = sshll.u32 (!%p195_p10), %s2078_s15, 12 }
  0x11   : > { %781 = vmatprep.subr.bf16.mxu0 (!%p195_p10), %v2088_v1  ;;  %1807 = vmatprep.subr.bf16.mxu1 (!%p195_p10), %v2088_v1  ;;  %v1905_v12 = vld [vmem:[%s2577_s1 + $0x48] sm:$0xff] (!%p195_p10)   ;;  %v1906_v13 = vld [vmem:[%s2577_s1 + $0x50] sm:$0xff] (!%p195_p10)   ;;  %v1907_v14 = vld [vmem:[%s2577_s1 + $0x58] sm:$0xff] (!%p195_p10)   ;;  %s2516_s11 = scalar_lea.hbm (!%p195_p10), %s2579_s3, %s1805_s7  ;;  %s2530_s15 = scalar_lea.sflag (!%p195_p10), [#allocation3], %s231_s30 }
  0x12   : > { %v1908_v15 = vld [vmem:[%s2577_s1 + $0x60] sm:$0xff] (!%p195_p10)   ;;  %v1909_v16 = vld [vmem:[%s2577_s1 + $0x68] sm:$0xff] (!%p195_p10)   ;;  %v1910_v17 = vld [vmem:[%s2577_s1 + $0x70] sm:$0xff] (!%p195_p10)   ;;  %s2089_s21 = smov (!%p195_p10), [#allocation2]  }
  0x13   : > { %v1911_v18 = vld [vmem:[%s2577_s1 + $0x78] sm:$0xff] (!%p195_p10)   ;;  %s2012_s23 = sshll.u32 (!%p195_p10), %s2089_s21, 4  ;;  %s2013_s23 = int_to_ptr.vmem [resolvable:$false] %s2012_s23 }
  0x14   : > { %782 = vmatpush1.bf16.msra.mxu0 (!%p195_p10), %v1897_v2  ;;  %1823 = vmatpush1.bf16.msra.mxu1 (!%p195_p10), %v1897_v2  ;;  %s2014_s26 = scalar_lea.vmem (!%p195_p10), %s2013_s23, 8192 }
  0x15   : > { %783 = vmatprep.subr.bf16.mxu0 (!%p195_p10), %v2088_v1  ;;  %1808 = vmatprep.subr.bf16.mxu1 (!%p195_p10), %v2088_v1 }
  0x16   : > { %s2590_s28 = smov (!%p236_p11, %s1587_s28), 255 }
  0x17   : > { %s1740_s8 = sshll.u32 %s2590_s28, 3 }
  0x18   : > { %784 = vmatpush1.bf16.msra.mxu0 %v1898_v3  ;;  %1824 = vmatpush1.bf16.msra.mxu1 %v1898_v3  ;;  %s2194_s19 = scalar_lea.vmem %s2576_s0, %s1740_s8 }
  0x19   : > { %785 = vmatprep.subr.bf16.mxu0 %v2088_v1  ;;  %1809 = vmatprep.subr.bf16.mxu1 %v2088_v1  ;;  %v1914_v6 = vld [vmem:[%s2194_s19 + $0x4] ss:$8 sps:$4 sm:$0xff]   ;;  %v1912_v19 = vld [vmem:[%s2194_s19] ss:$8 sps:$4 sm:$0xff]   ;;  %v1918_v21 = vld [vmem:[%s2194_s19 + $0x14] ss:$8 sps:$4 sm:$0xff]  }
  0x1a   : > { %v1917_v8 = vld [vmem:[%s2194_s19 + $0x104] ss:$8 sps:$4 sm:$0xff]   ;;  %811 = vmatprep.mubr.bf16.mxu0 %v1914_v6  ;;  %v1915_v20 = vld [vmem:[%s2194_s19 + $0x100] ss:$8 sps:$4 sm:$0xff]   ;;  %v1920_v22 = vld [vmem:[%s2194_s19 + $0x114] ss:$8 sps:$4 sm:$0xff]  }
  0x1b   : > { %939 = vmatprep.mubr.bf16.mxu1 %v1917_v8  ;;  %v1922_v23 = vld [vmem:[%s2194_s19 + $0x10] ss:$8 sps:$4 sm:$0xff]   ;;  %v1924_v25 = vld [vmem:[%s2194_s19 + $0x24] ss:$8 sps:$4 sm:$0xff]   ;;  %v1928_v27 = vld [vmem:[%s2194_s19 + $0x20] ss:$8 sps:$4 sm:$0xff]  }
  0x1c   : > { %786 = vmatpush1.bf16.msra.mxu0 %v1899_v4  ;;  %1825 = vmatpush1.bf16.msra.mxu1 %v1899_v4  ;;  %v1923_v24 = vld [vmem:[%s2194_s19 + $0x110] ss:$8 sps:$4 sm:$0xff]   ;;  %v1926_v26 = vld [vmem:[%s2194_s19 + $0x124] ss:$8 sps:$4 sm:$0xff]   ;;  %v1929_v28 = vld [vmem:[%s2194_s19 + $0x120] ss:$8 sps:$4 sm:$0xff]  }
  0x1d   : > { %787 = vmatprep.subr.bf16.mxu0 %v2088_v1  ;;  %1810 = vmatprep.subr.bf16.mxu1 %v2088_v1  ;;  %v1930_v29 = vld [vmem:[%s2194_s19 + $0x34] ss:$8 sps:$4 sm:$0xff]   ;;  %v1934_v31 = vld [vmem:[%s2194_s19 + $0x30] ss:$8 sps:$4 sm:$0xff]   ;;  %v1936_v33 = vld [vmem:[%s2194_s19 + $0x44] ss:$8 sps:$4 sm:$0xff]  }
  0x1e   : > { %v1932_v30 = vld [vmem:[%s2194_s19 + $0x134] ss:$8 sps:$4 sm:$0xff]   ;;  %v1935_v32 = vld [vmem:[%s2194_s19 + $0x130] ss:$8 sps:$4 sm:$0xff]   ;;  %v1938_v34 = vld [vmem:[%s2194_s19 + $0x144] ss:$8 sps:$4 sm:$0xff]  }
  0x1f   : > { %v1940_v35 = vld [vmem:[%s2194_s19 + $0x40] ss:$8 sps:$4 sm:$0xff]   ;;  %v1942_v37 = vld [vmem:[%s2194_s19 + $0x54] ss:$8 sps:$4 sm:$0xff]   ;;  %v1946_v39 = vld [vmem:[%s2194_s19 + $0x50] ss:$8 sps:$4 sm:$0xff]  }
  0x20   : > { %788 = vmatpush1.bf16.msra.mxu0 %v1900_v5  ;;  %1826 = vmatpush1.bf16.msra.mxu1 %v1900_v5  ;;  %v1941_v36 = vld [vmem:[%s2194_s19 + $0x140] ss:$8 sps:$4 sm:$0xff]   ;;  %v1944_v38 = vld [vmem:[%s2194_s19 + $0x154] ss:$8 sps:$4 sm:$0xff]   ;;  %v1947_v40 = vld [vmem:[%s2194_s19 + $0x150] ss:$8 sps:$4 sm:$0xff]  }
  0x21   : > { %789 = vmatprep.subr.bf16.mxu0 %v2088_v1  ;;  %1811 = vmatprep.subr.bf16.mxu1 %v2088_v1  ;;  %v1948_v41 = vld [vmem:[%s2194_s19 + $0x64] ss:$8 sps:$4 sm:$0xff]   ;;  %v1952_v43 = vld [vmem:[%s2194_s19 + $0x60] ss:$8 sps:$4 sm:$0xff]   ;;  %v1954_v45 = vld [vmem:[%s2194_s19 + $0x74] ss:$8 sps:$4 sm:$0xff]  }
  0x22   : > { %v1950_v42 = vld [vmem:[%s2194_s19 + $0x164] ss:$8 sps:$4 sm:$0xff]   ;;  %v1953_v44 = vld [vmem:[%s2194_s19 + $0x160] ss:$8 sps:$4 sm:$0xff]   ;;  %v1956_v46 = vld [vmem:[%s2194_s19 + $0x174] ss:$8 sps:$4 sm:$0xff]  }
  0x23   : > { %v1958_v47 = vld [vmem:[%s2194_s19 + $0x70] ss:$8 sps:$4 sm:$0xff]   ;;  %v1960_v49 = vld [vmem:[%s2194_s19 + $0x84] ss:$8 sps:$4 sm:$0xff]   ;;  %v1964_v51 = vld [vmem:[%s2194_s19 + $0x80] ss:$8 sps:$4 sm:$0xff]  }
  0x24   : > { %790 = vmatpush1.bf16.msra.mxu0 %v1901_v7  ;;  %1827 = vmatpush1.bf16.msra.mxu1 %v1901_v7  ;;  %v1959_v48 = vld [vmem:[%s2194_s19 + $0x170] ss:$8 sps:$4 sm:$0xff]   ;;  %v1962_v50 = vld [vmem:[%s2194_s19 + $0x184] ss:$8 sps:$4 sm:$0xff]   ;;  %v1965_v52 = vld [vmem:[%s2194_s19 + $0x180] ss:$8 sps:$4 sm:$0xff]  }
  0x25   : > { %791 = vmatprep.subr.bf16.mxu0 %v2088_v1  ;;  %1812 = vmatprep.subr.bf16.mxu1 %v2088_v1  ;;  %v1966_v53 = vld [vmem:[%s2194_s19 + $0x94] ss:$8 sps:$4 sm:$0xff]   ;;  %v1970_v55 = vld [vmem:[%s2194_s19 + $0x90] ss:$8 sps:$4 sm:$0xff]   ;;  %v1972_v57 = vld [vmem:[%s2194_s19 + $0xa4] ss:$8 sps:$4 sm:$0xff]  }
  0x26   : > { %v1968_v54 = vld [vmem:[%s2194_s19 + $0x194] ss:$8 sps:$4 sm:$0xff]   ;;  %v1971_v56 = vld [vmem:[%s2194_s19 + $0x190] ss:$8 sps:$4 sm:$0xff]   ;;  %v1974_v58 = vld [vmem:[%s2194_s19 + $0x1a4] ss:$8 sps:$4 sm:$0xff]  }
  0x27   : > { %v1976_v59 = vld [vmem:[%s2194_s19 + $0xa0] ss:$8 sps:$4 sm:$0xff]   ;;  %v1978_v61 = vld [vmem:[%s2194_s19 + $0xb4] ss:$8 sps:$4 sm:$0xff]   ;;  %v1982_v63 = vld [vmem:[%s2194_s19 + $0xb0] ss:$8 sps:$4 sm:$0xff]  }
  0x28   : > { %792 = vmatpush1.bf16.msra.mxu0 %v1902_v9  ;;  %1828 = vmatpush1.bf16.msra.mxu1 %v1902_v9  ;;  %v1977_v60 = vld [vmem:[%s2194_s19 + $0x1a0] ss:$8 sps:$4 sm:$0xff]   ;;  %v1980_v62 = vld [vmem:[%s2194_s19 + $0x1b4] ss:$8 sps:$4 sm:$0xff]   ;;  %v1983_v0 = vld [vmem:[%s2194_s19 + $0x1b0] ss:$8 sps:$4 sm:$0xff]  }
  0x29   : > { %793 = vmatprep.subr.bf16.mxu0 %v2088_v1  ;;  %1813 = vmatprep.subr.bf16.mxu1 %v2088_v1  ;;  %v1986_v2 = vld [vmem:[%s2194_s19 + $0x1c4] ss:$8 sps:$4 sm:$0xff]   ;;  %v1988_v3 = vld [vmem:[%s2194_s19 + $0xc0] ss:$8 sps:$4 sm:$0xff]   ;;  %v1990_v5 = vld [vmem:[%s2194_s19 + $0xd4] ss:$8 sps:$4 sm:$0xff]  }
  0x2a   : > { %v1989_v4 = vld [vmem:[%s2194_s19 + $0x1c0] ss:$8 sps:$4 sm:$0xff]   ;;  %v1992_v6 = vld [vmem:[%s2194_s19 + $0x1d4] ss:$8 sps:$4 sm:$0xff]   ;;  %v1994_v7 = vld [vmem:[%s2194_s19 + $0xd0] ss:$8 sps:$4 sm:$0xff]  }
  0x2b   : > { %v1995_v8 = vld [vmem:[%s2194_s19 + $0x1d0] ss:$8 sps:$4 sm:$0xff]   ;;  %v1996_v9 = vld [vmem:[%s2194_s19 + $0xe4] ss:$8 sps:$4 sm:$0xff]  }
  0x2c   : > { %794 = vmatpush1.bf16.msra.mxu0 %v1903_v10  ;;  %1829 = vmatpush1.bf16.msra.mxu1 %v1903_v10  ;;  %v1998_v10 = vld [vmem:[%s2194_s19 + $0x1e4] ss:$8 sps:$4 sm:$0xff]  }
  0x2d   : > { %795 = vmatprep.subr.bf16.mxu0 %v2088_v1  ;;  %1814 = vmatprep.subr.bf16.mxu1 %v2088_v1 }
  0x30   : > { %796 = vmatpush1.bf16.msra.mxu0 %v1904_v11  ;;  %1830 = vmatpush1.bf16.msra.mxu1 %v1904_v11  ;;  %v2000_v11 = vld [vmem:[%s2194_s19 + $0xe0] ss:$8 sps:$4 sm:$0xff]  }
  0x31   : > { %797 = vmatprep.subr.bf16.mxu0 %v2088_v1  ;;  %1815 = vmatprep.subr.bf16.mxu1 %v2088_v1 }
  0x34   : > { %798 = vmatpush1.bf16.msra.mxu0 %v1905_v12  ;;  %1831 = vmatpush1.bf16.msra.mxu1 %v1905_v12  ;;  %v2001_v12 = vld [vmem:[%s2194_s19 + $0x1e0] ss:$8 sps:$4 sm:$0xff]  }
  0x35   : > { %799 = vmatprep.subr.bf16.mxu0 %v2088_v1  ;;  %1816 = vmatprep.subr.bf16.mxu1 %v2088_v1 }
  0x38   : > { %800 = vmatpush1.bf16.msra.mxu0 %v1906_v13  ;;  %1832 = vmatpush1.bf16.msra.mxu1 %v1906_v13  ;;  %v2002_v13 = vld [vmem:[%s2194_s19 + $0xf4] ss:$8 sps:$4 sm:$0xff]  }
  0x39   : > { %801 = vmatprep.subr.bf16.mxu0 %v2088_v1  ;;  %1817 = vmatprep.subr.bf16.mxu1 %v2088_v1 }
  0x3c   : > { %802 = vmatpush1.bf16.msra.mxu0 %v1907_v14  ;;  %1833 = vmatpush1.bf16.msra.mxu1 %v1907_v14  ;;  %v2004_v14 = vld [vmem:[%s2194_s19 + $0x1f4] ss:$8 sps:$4 sm:$0xff]  }
  0x3d   : > { %803 = vmatprep.subr.bf16.mxu0 %v2088_v1  ;;  %1818 = vmatprep.subr.bf16.mxu1 %v2088_v1 }
  0x40   : > { %804 = vmatpush1.bf16.msra.mxu0 %v1908_v15  ;;  %1834 = vmatpush1.bf16.msra.mxu1 %v1908_v15  ;;  %v2006_v15 = vld [vmem:[%s2194_s19 + $0xf0] ss:$8 sps:$4 sm:$0xff]  }
  0x41   : > { %805 = vmatprep.subr.bf16.mxu0 %v2088_v1  ;;  %1819 = vmatprep.subr.bf16.mxu1 %v2088_v1 }
  0x44   : > { %806 = vmatpush1.bf16.msra.mxu0 %v1909_v16  ;;  %1835 = vmatpush1.bf16.msra.mxu1 %v1909_v16  ;;  %v2007_v16 = vld [vmem:[%s2194_s19 + $0x1f0] ss:$8 sps:$4 sm:$0xff]  }
  0x45   : > { %807 = vmatprep.subr.bf16.mxu0 %v2088_v1  ;;  %1820 = vmatprep.subr.bf16.mxu1 %v2088_v1 }
  0x48   : > { %808 = vmatpush1.bf16.msra.mxu0 %v1910_v17  ;;  %1836 = vmatpush1.bf16.msra.mxu1 %v1910_v17  ;;  %v2321_v17 = vld [vmem:[%s2578_s2] ss:$0 sm:$0xff] }
  0x49   : > { %809 = vmatprep.subr.bf16.mxu0 %v2088_v1  ;;  %1821 = vmatprep.subr.bf16.mxu1 %v2088_v1  ;;  %v1984_v1 = vld [vmem:[%s2194_s19 + $0xc4] ss:$8 sps:$4 sm:$0xff]   ;;  %s2329_s19 = scalar_lea.vmem [#allocation2], %s1586_s6 }
  0x4a   : > { %s1468_s8 = sshll.u32 %s2329_s19, 4  ;;  %s2518_s8 = int_to_ptr.vmem [resolvable:$true] %s1468_s8 }
  0x4b   : > { %s2008_s18 = scalar_lea.vmem %s2518_s8, 4096  ;;  %p2015_p1 = scmp.lt.s32.totalorder %s2518_s8, %s2013_s23 }
  0x4c   : > { %810 = vmatpush1.bf16.msra.mxu0 %v1911_v18  ;;  %1837 = vmatpush1.bf16.msra.mxu1 %v1911_v18  ;;  %p2009_p12 = scmp.ne.s32.totalorder %s2518_s8, %s2008_s18  ;;  %p2016_p2 = scmp.lt.s32.totalorder %s2014_s26, %s2008_s18 }
  0x4e   : > { %p2010_p13 = pnand %p2009_p12, %p2152_p4  ;;  %p2017_p3 = por %p2016_p2, %p2015_p1 }
  0x4f   : > { %812 = vmatmul.mubr.bf16.vlgmr.msra.gmra.mrb[0].mxu0 %v1912_v19  ;;  %940 = vmatmul.mubr.bf16.vlgmr.msra.gmra.mrb[0].mxu1 %v1915_v20 }
  0x50   : > { %819 = vmatprep.mubr.bf16.mxu0 %v1918_v21  ;;  %947 = vmatprep.mubr.bf16.mxu1 %v1920_v22  ;;  %p2011_p0 = pneg %p2010_p13 }
  0x52   : > { %p2018_p5 = pnand %p2017_p3, %p2011_p0 }
  0x57   : > { %820 = vmatmul.mubr.bf16.gmra.mrb[4].mxu0 %v1922_v23  ;;  %948 = vmatmul.mubr.bf16.gmra.mrb[4].mxu1 %v1923_v24 }
  0x58   : > { %827 = vmatprep.mubr.bf16.mxu0 %v1924_v25  ;;  %955 = vmatprep.mubr.bf16.mxu1 %v1926_v26 }
  0x5f   : > { %828 = vmatmul.mubr.bf16.gmra.mrb[8].mxu0 %v1928_v27  ;;  %956 = vmatmul.mubr.bf16.gmra.mrb[8].mxu1 %v1929_v28 }
  0x60   : > { %835 = vmatprep.mubr.bf16.mxu0 %v1930_v29  ;;  %963 = vmatprep.mubr.bf16.mxu1 %v1932_v30 }
  0x67   : > { %836 = vmatmul.mubr.bf16.gmra.mrb[12].mxu0 %v1934_v31  ;;  %964 = vmatmul.mubr.bf16.gmra.mrb[12].mxu1 %v1935_v32 }
  0x68   : > { %843 = vmatprep.mubr.bf16.mxu0 %v1936_v33  ;;  %971 = vmatprep.mubr.bf16.mxu1 %v1938_v34 }
  0x6f   : > { %844 = vmatmul.mubr.bf16.gmra.mrb[16].mxu0 %v1940_v35  ;;  %972 = vmatmul.mubr.bf16.gmra.mrb[16].mxu1 %v1941_v36 }
  0x70   : > { %851 = vmatprep.mubr.bf16.mxu0 %v1942_v37  ;;  %979 = vmatprep.mubr.bf16.mxu1 %v1944_v38 }
  0x77   : > { %852 = vmatmul.mubr.bf16.gmra.mrb[20].mxu0 %v1946_v39  ;;  %980 = vmatmul.mubr.bf16.gmra.mrb[20].mxu1 %v1947_v40 }
  0x78   : > { %859 = vmatprep.mubr.bf16.mxu0 %v1948_v41  ;;  %987 = vmatprep.mubr.bf16.mxu1 %v1950_v42 }
  0x7f   : > { %860 = vmatmul.mubr.bf16.gmra.mrb[24].mxu0 %v1952_v43  ;;  %988 = vmatmul.mubr.bf16.gmra.mrb[24].mxu1 %v1953_v44 }
  0x80   : > { %867 = vmatprep.mubr.bf16.mxu0 %v1954_v45  ;;  %995 = vmatprep.mubr.bf16.mxu1 %v1956_v46 }
  0x87   : > { %868 = vmatmul.mubr.bf16.gmra.mrb[28].mxu0 %v1958_v47  ;;  %996 = vmatmul.mubr.bf16.gmra.mrb[28].mxu1 %v1959_v48 }
  0x88   : > { %875 = vmatprep.mubr.bf16.mxu0 %v1960_v49  ;;  %1003 = vmatprep.mubr.bf16.mxu1 %v1962_v50 }
  0x8f   : > { %876 = vmatmul.mubr.bf16.gmra.mrb[32].mxu0 %v1964_v51  ;;  %1004 = vmatmul.mubr.bf16.gmra.mrb[32].mxu1 %v1965_v52 }
  0x90   : > { %883 = vmatprep.mubr.bf16.mxu0 %v1966_v53  ;;  %1011 = vmatprep.mubr.bf16.mxu1 %v1968_v54 }
  0x97   : > { %884 = vmatmul.mubr.bf16.gmra.mrb[36].mxu0 %v1970_v55  ;;  %1012 = vmatmul.mubr.bf16.gmra.mrb[36].mxu1 %v1971_v56 }
  0x98   : > { %891 = vmatprep.mubr.bf16.mxu0 %v1972_v57  ;;  %1019 = vmatprep.mubr.bf16.mxu1 %v1974_v58 }
  0x9f   : > { %892 = vmatmul.mubr.bf16.gmra.mrb[40].mxu0 %v1976_v59  ;;  %1020 = vmatmul.mubr.bf16.gmra.mrb[40].mxu1 %v1977_v60 }
  0xa0   : > { %899 = vmatprep.mubr.bf16.mxu0 %v1978_v61  ;;  %1027 = vmatprep.mubr.bf16.mxu1 %v1980_v62 }
  0xa7   : > { %900 = vmatmul.mubr.bf16.gmra.mrb[44].mxu0 %v1982_v63  ;;  %1028 = vmatmul.mubr.bf16.gmra.mrb[44].mxu1 %v1983_v0 }
  0xa8   : > { %907 = vmatprep.mubr.bf16.mxu0 %v1984_v1  ;;  %1035 = vmatprep.mubr.bf16.mxu1 %v1986_v2 }
  0xaf   : > { %908 = vmatmul.mubr.bf16.gmra.mrb[48].mxu0 %v1988_v3  ;;  %1036 = vmatmul.mubr.bf16.gmra.mrb[48].mxu1 %v1989_v4 }
  0xb0   : > { %915 = vmatprep.mubr.bf16.mxu0 %v1990_v5  ;;  %1043 = vmatprep.mubr.bf16.mxu1 %v1992_v6 }
  0xb7   : > { %916 = vmatmul.mubr.bf16.gmra.mrb[52].mxu0 %v1994_v7  ;;  %1044 = vmatmul.mubr.bf16.gmra.mrb[52].mxu1 %v1995_v8 }
  0xb8   : > { %923 = vmatprep.mubr.bf16.mxu0 %v1996_v9  ;;  %1051 = vmatprep.mubr.bf16.mxu1 %v1998_v10 }
  0xbf   : > { %924 = vmatmul.mubr.bf16.gmra.mrb[56].mxu0 %v2000_v11  ;;  %1052 = vmatmul.mubr.bf16.gmra.mrb[56].mxu1 %v2001_v12 }
  0xc0   : > { %931 = vmatprep.mubr.bf16.mxu0 %v2002_v13  ;;  %1059 = vmatprep.mubr.bf16.mxu1 %v2004_v14 }
  0xc7   : > { %932 = vmatmul.mubr.bf16.gmra.mrb[60].mxu0 %v2006_v15  ;;  %1060 = vmatmul.mubr.bf16.gmra.mrb[60].mxu1 %v2007_v16 }
 0x122   : > { %v813_v18 = vpop.f32.mrb[0].mxu0  ;;  %v941_v19 = vpop.f32.mrb[0].mxu1 }
 0x123   : > { %v814_v20 = vadd.f32 %v2321_v17, %v813_v18  ;;  %v942_v21 = vadd.f32 %v2321_v17, %v941_v19  ;;  %v815_v22 = vpop.f32.mrb[1].mxu0  ;;  %v943_v23 = vpop.f32.mrb[1].mxu1 }
 0x124   : > { %v816_v24 = vpop.f32.mrb[2].mxu0  ;;  %v944_v25 = vpop.f32.mrb[2].mxu1 }
 0x125   : > { %v1068_v26 = vmax.f32 %v814_v20, 0.0  ;;  %v1100_v27 = vmax.f32 %v942_v21, 0.0  ;;  %v817_v28 = vadd.f32 %v2321_v17, %v816_v24  ;;  %v945_v29 = vadd.f32 %v2321_v17, %v944_v25  ;;  %v818_v30 = vpop.f32.mrb[3].mxu0  ;;  %v946_v31 = vpop.f32.mrb[3].mxu1 }
 0x127   : > { %v1741_v32 = vpack.c.bf16 %v1068_v26, %v1068_v26  ;;  %v1773_v33 = vpack.c.bf16 %v1100_v27, %v1100_v27  ;;  %v1069_v34 = vmax.f32 %v817_v28, 0.0  ;;  %v1101_v35 = vmax.f32 %v945_v29, 0.0 }
 0x129   : > { %1389 = vst.msk [vmem:[%s2329_s19] sm:$0xf] %vm1388_vm0, %v1741_v32  ;;  %1421 = vst.msk [vmem:[%s2329_s19 + $0x80] sm:$0xf] %vm1388_vm0, %v1773_v33  ;;  %v1742_v36 = vpack.c.bf16 %v1069_v34, %v1069_v34  ;;  %v1774_v37 = vpack.c.bf16 %v1101_v35, %v1101_v35 }
 0x12a   : > { %v821_v38 = vpop.f32.mrb[4].mxu0  ;;  %v949_v39 = vpop.f32.mrb[4].mxu1 }
 0x12b   : > { %1390 = vst.msk [vmem:[%s2329_s19 + $0x4] sm:$0xf] %vm1388_vm0, %v1742_v36  ;;  %1422 = vst.msk [vmem:[%s2329_s19 + $0x84] sm:$0xf] %vm1388_vm0, %v1774_v37  ;;  %v822_v40 = vadd.f32 %v2321_v17, %v821_v38  ;;  %v950_v41 = vadd.f32 %v2321_v17, %v949_v39  ;;  %v823_v42 = vpop.f32.mrb[5].mxu0  ;;  %v951_v43 = vpop.f32.mrb[5].mxu1 }
 0x12c   : > { %v824_v44 = vpop.f32.mrb[6].mxu0  ;;  %v952_v45 = vpop.f32.mrb[6].mxu1 }
 0x12d   : > { %v1070_v46 = vmax.f32 %v822_v40, 0.0  ;;  %v1102_v47 = vmax.f32 %v950_v41, 0.0  ;;  %v825_v48 = vadd.f32 %v2321_v17, %v824_v44  ;;  %v953_v49 = vadd.f32 %v2321_v17, %v952_v45  ;;  %v826_v50 = vpop.f32.mrb[7].mxu0  ;;  %v954_v51 = vpop.f32.mrb[7].mxu1 }
 0x12f   : > { %v1743_v52 = vpack.c.bf16 %v1070_v46, %v1070_v46  ;;  %v1775_v53 = vpack.c.bf16 %v1102_v47, %v1102_v47  ;;  %v1071_v54 = vmax.f32 %v825_v48, 0.0  ;;  %v1103_v55 = vmax.f32 %v953_v49, 0.0 }
 0x131   : > { %1391 = vst.msk [vmem:[%s2329_s19 + $0x8] sm:$0xf] %vm1388_vm0, %v1743_v52  ;;  %1423 = vst.msk [vmem:[%s2329_s19 + $0x88] sm:$0xf] %vm1388_vm0, %v1775_v53  ;;  %v1744_v56 = vpack.c.bf16 %v1071_v54, %v1071_v54  ;;  %v1776_v57 = vpack.c.bf16 %v1103_v55, %v1103_v55 }
 0x132   : > { %v829_v58 = vpop.f32.mrb[8].mxu0  ;;  %v957_v59 = vpop.f32.mrb[8].mxu1 }
 0x133   : > { %1392 = vst.msk [vmem:[%s2329_s19 + $0xc] sm:$0xf] %vm1388_vm0, %v1744_v56  ;;  %1424 = vst.msk [vmem:[%s2329_s19 + $0x8c] sm:$0xf] %vm1388_vm0, %v1776_v57  ;;  %v830_v60 = vadd.f32 %v2321_v17, %v829_v58  ;;  %v958_v61 = vadd.f32 %v2321_v17, %v957_v59  ;;  %v831_v62 = vpop.f32.mrb[9].mxu0  ;;  %v959_v63 = vpop.f32.mrb[9].mxu1 }
 0x134   : > { %v832_v0 = vpop.f32.mrb[10].mxu0  ;;  %v960_v1 = vpop.f32.mrb[10].mxu1 }
 0x135   : > { %v1072_v2 = vmax.f32 %v830_v60, 0.0  ;;  %v1104_v3 = vmax.f32 %v958_v61, 0.0  ;;  %v833_v4 = vadd.f32 %v2321_v17, %v832_v0  ;;  %v961_v5 = vadd.f32 %v2321_v17, %v960_v1  ;;  %v834_v6 = vpop.f32.mrb[11].mxu0  ;;  %v962_v7 = vpop.f32.mrb[11].mxu1 }
 0x137   : > { %v1745_v8 = vpack.c.bf16 %v1072_v2, %v1072_v2  ;;  %v1777_v9 = vpack.c.bf16 %v1104_v3, %v1104_v3  ;;  %v1073_v10 = vmax.f32 %v833_v4, 0.0  ;;  %v1105_v11 = vmax.f32 %v961_v5, 0.0 }
 0x139   : > { %1393 = vst.msk [vmem:[%s2329_s19 + $0x10] sm:$0xf] %vm1388_vm0, %v1745_v8  ;;  %1425 = vst.msk [vmem:[%s2329_s19 + $0x90] sm:$0xf] %vm1388_vm0, %v1777_v9  ;;  %v1746_v12 = vpack.c.bf16 %v1073_v10, %v1073_v10  ;;  %v1778_v13 = vpack.c.bf16 %v1105_v11, %v1105_v11 }
 0x13a   : > { %v837_v14 = vpop.f32.mrb[12].mxu0  ;;  %v965_v15 = vpop.f32.mrb[12].mxu1 }
 0x13b   : > { %1394 = vst.msk [vmem:[%s2329_s19 + $0x14] sm:$0xf] %vm1388_vm0, %v1746_v12  ;;  %1426 = vst.msk [vmem:[%s2329_s19 + $0x94] sm:$0xf] %vm1388_vm0, %v1778_v13  ;;  %v838_v16 = vadd.f32 %v2321_v17, %v837_v14  ;;  %v966_v18 = vadd.f32 %v2321_v17, %v965_v15  ;;  %v839_v19 = vpop.f32.mrb[13].mxu0  ;;  %v967_v20 = vpop.f32.mrb[13].mxu1 }
 0x13c   : > { %v840_v21 = vpop.f32.mrb[14].mxu0  ;;  %v968_v22 = vpop.f32.mrb[14].mxu1 }
 0x13d   : > { %v1074_v23 = vmax.f32 %v838_v16, 0.0  ;;  %v1106_v24 = vmax.f32 %v966_v18, 0.0  ;;  %v841_v25 = vadd.f32 %v2321_v17, %v840_v21  ;;  %v969_v26 = vadd.f32 %v2321_v17, %v968_v22  ;;  %v842_v27 = vpop.f32.mrb[15].mxu0  ;;  %v970_v28 = vpop.f32.mrb[15].mxu1 }
 0x13f   : > { %v1747_v29 = vpack.c.bf16 %v1074_v23, %v1074_v23  ;;  %v1779_v30 = vpack.c.bf16 %v1106_v24, %v1106_v24  ;;  %v1075_v31 = vmax.f32 %v841_v25, 0.0  ;;  %v1107_v32 = vmax.f32 %v969_v26, 0.0 }
 0x141   : > { %1395 = vst.msk [vmem:[%s2329_s19 + $0x18] sm:$0xf] %vm1388_vm0, %v1747_v29  ;;  %1427 = vst.msk [vmem:[%s2329_s19 + $0x98] sm:$0xf] %vm1388_vm0, %v1779_v30  ;;  %v1748_v33 = vpack.c.bf16 %v1075_v31, %v1075_v31  ;;  %v1780_v34 = vpack.c.bf16 %v1107_v32, %v1107_v32 }
 0x142   : > { %v845_v35 = vpop.f32.mrb[16].mxu0  ;;  %v973_v36 = vpop.f32.mrb[16].mxu1 }
 0x143   : > { %1396 = vst.msk [vmem:[%s2329_s19 + $0x1c] sm:$0xf] %vm1388_vm0, %v1748_v33  ;;  %1428 = vst.msk [vmem:[%s2329_s19 + $0x9c] sm:$0xf] %vm1388_vm0, %v1780_v34  ;;  %v846_v37 = vadd.f32 %v2321_v17, %v845_v35  ;;  %v974_v38 = vadd.f32 %v2321_v17, %v973_v36  ;;  %v847_v39 = vpop.f32.mrb[17].mxu0  ;;  %v975_v40 = vpop.f32.mrb[17].mxu1 }
 0x144   : > { %v848_v41 = vpop.f32.mrb[18].mxu0  ;;  %v976_v42 = vpop.f32.mrb[18].mxu1 }
 0x145   : > { %v1076_v43 = vmax.f32 %v846_v37, 0.0  ;;  %v1108_v44 = vmax.f32 %v974_v38, 0.0  ;;  %v849_v45 = vadd.f32 %v2321_v17, %v848_v41  ;;  %v977_v46 = vadd.f32 %v2321_v17, %v976_v42  ;;  %v850_v47 = vpop.f32.mrb[19].mxu0  ;;  %v978_v48 = vpop.f32.mrb[19].mxu1 }
 0x147   : > { %v1749_v49 = vpack.c.bf16 %v1076_v43, %v1076_v43  ;;  %v1781_v50 = vpack.c.bf16 %v1108_v44, %v1108_v44  ;;  %v1077_v51 = vmax.f32 %v849_v45, 0.0  ;;  %v1109_v52 = vmax.f32 %v977_v46, 0.0 }
 0x149   : > { %1397 = vst.msk [vmem:[%s2329_s19 + $0x20] sm:$0xf] %vm1388_vm0, %v1749_v49  ;;  %1429 = vst.msk [vmem:[%s2329_s19 + $0xa0] sm:$0xf] %vm1388_vm0, %v1781_v50  ;;  %v1750_v53 = vpack.c.bf16 %v1077_v51, %v1077_v51  ;;  %v1782_v54 = vpack.c.bf16 %v1109_v52, %v1109_v52 }
 0x14a   : > { %v853_v55 = vpop.f32.mrb[20].mxu0  ;;  %v981_v56 = vpop.f32.mrb[20].mxu1 }
 0x14b   : > { %1398 = vst.msk [vmem:[%s2329_s19 + $0x24] sm:$0xf] %vm1388_vm0, %v1750_v53  ;;  %1430 = vst.msk [vmem:[%s2329_s19 + $0xa4] sm:$0xf] %vm1388_vm0, %v1782_v54  ;;  %v854_v57 = vadd.f32 %v2321_v17, %v853_v55  ;;  %v982_v58 = vadd.f32 %v2321_v17, %v981_v56  ;;  %v855_v59 = vpop.f32.mrb[21].mxu0  ;;  %v983_v60 = vpop.f32.mrb[21].mxu1 }
 0x14c   : > { %v856_v61 = vpop.f32.mrb[22].mxu0  ;;  %v984_v62 = vpop.f32.mrb[22].mxu1 }
 0x14d   : > { %v1078_v63 = vmax.f32 %v854_v57, 0.0  ;;  %v1110_v0 = vmax.f32 %v982_v58, 0.0  ;;  %v857_v1 = vadd.f32 %v2321_v17, %v856_v61  ;;  %v985_v2 = vadd.f32 %v2321_v17, %v984_v62  ;;  %v858_v3 = vpop.f32.mrb[23].mxu0  ;;  %v986_v4 = vpop.f32.mrb[23].mxu1 }
 0x14f   : > { %v1751_v5 = vpack.c.bf16 %v1078_v63, %v1078_v63  ;;  %v1783_v6 = vpack.c.bf16 %v1110_v0, %v1110_v0  ;;  %v1079_v7 = vmax.f32 %v857_v1, 0.0  ;;  %v1111_v8 = vmax.f32 %v985_v2, 0.0 }
 0x151   : > { %1399 = vst.msk [vmem:[%s2329_s19 + $0x28] sm:$0xf] %vm1388_vm0, %v1751_v5  ;;  %1431 = vst.msk [vmem:[%s2329_s19 + $0xa8] sm:$0xf] %vm1388_vm0, %v1783_v6  ;;  %v1752_v9 = vpack.c.bf16 %v1079_v7, %v1079_v7  ;;  %v1784_v10 = vpack.c.bf16 %v1111_v8, %v1111_v8 }
 0x152   : > { %v861_v11 = vpop.f32.mrb[24].mxu0  ;;  %v989_v12 = vpop.f32.mrb[24].mxu1 }
 0x153   : > { %1400 = vst.msk [vmem:[%s2329_s19 + $0x2c] sm:$0xf] %vm1388_vm0, %v1752_v9  ;;  %1432 = vst.msk [vmem:[%s2329_s19 + $0xac] sm:$0xf] %vm1388_vm0, %v1784_v10  ;;  %v862_v13 = vadd.f32 %v2321_v17, %v861_v11  ;;  %v990_v14 = vadd.f32 %v2321_v17, %v989_v12  ;;  %v863_v15 = vpop.f32.mrb[25].mxu0  ;;  %v991_v16 = vpop.f32.mrb[25].mxu1 }
 0x154   : > { %v864_v18 = vpop.f32.mrb[26].mxu0  ;;  %v992_v19 = vpop.f32.mrb[26].mxu1 }
 0x155   : > { %v1080_v20 = vmax.f32 %v862_v13, 0.0  ;;  %v1112_v21 = vmax.f32 %v990_v14, 0.0  ;;  %v865_v22 = vadd.f32 %v2321_v17, %v864_v18  ;;  %v993_v23 = vadd.f32 %v2321_v17, %v992_v19  ;;  %v866_v24 = vpop.f32.mrb[27].mxu0  ;;  %v994_v25 = vpop.f32.mrb[27].mxu1 }
 0x157   : > { %v1753_v26 = vpack.c.bf16 %v1080_v20, %v1080_v20  ;;  %v1785_v27 = vpack.c.bf16 %v1112_v21, %v1112_v21  ;;  %v1081_v28 = vmax.f32 %v865_v22, 0.0  ;;  %v1113_v29 = vmax.f32 %v993_v23, 0.0 }
 0x159   : > { %1401 = vst.msk [vmem:[%s2329_s19 + $0x30] sm:$0xf] %vm1388_vm0, %v1753_v26  ;;  %1433 = vst.msk [vmem:[%s2329_s19 + $0xb0] sm:$0xf] %vm1388_vm0, %v1785_v27  ;;  %v1754_v30 = vpack.c.bf16 %v1081_v28, %v1081_v28  ;;  %v1786_v31 = vpack.c.bf16 %v1113_v29, %v1113_v29 }
 0x15a   : > { %v869_v32 = vpop.f32.mrb[28].mxu0  ;;  %v997_v33 = vpop.f32.mrb[28].mxu1 }
 0x15b   : > { %1402 = vst.msk [vmem:[%s2329_s19 + $0x34] sm:$0xf] %vm1388_vm0, %v1754_v30  ;;  %1434 = vst.msk [vmem:[%s2329_s19 + $0xb4] sm:$0xf] %vm1388_vm0, %v1786_v31  ;;  %v870_v34 = vadd.f32 %v2321_v17, %v869_v32  ;;  %v998_v35 = vadd.f32 %v2321_v17, %v997_v33  ;;  %v871_v36 = vpop.f32.mrb[29].mxu0  ;;  %v999_v37 = vpop.f32.mrb[29].mxu1 }
 0x15c   : > { %v872_v38 = vpop.f32.mrb[30].mxu0  ;;  %v1000_v39 = vpop.f32.mrb[30].mxu1 }
 0x15d   : > { %v1082_v40 = vmax.f32 %v870_v34, 0.0  ;;  %v1114_v41 = vmax.f32 %v998_v35, 0.0  ;;  %v873_v42 = vadd.f32 %v2321_v17, %v872_v38  ;;  %v1001_v43 = vadd.f32 %v2321_v17, %v1000_v39  ;;  %v874_v44 = vpop.f32.mrb[31].mxu0  ;;  %v1002_v45 = vpop.f32.mrb[31].mxu1 }
 0x15f   : > { %v1755_v46 = vpack.c.bf16 %v1082_v40, %v1082_v40  ;;  %v1787_v47 = vpack.c.bf16 %v1114_v41, %v1114_v41  ;;  %v1083_v48 = vmax.f32 %v873_v42, 0.0  ;;  %v1115_v49 = vmax.f32 %v1001_v43, 0.0 }
 0x161   : > { %1403 = vst.msk [vmem:[%s2329_s19 + $0x38] sm:$0xf] %vm1388_vm0, %v1755_v46  ;;  %1435 = vst.msk [vmem:[%s2329_s19 + $0xb8] sm:$0xf] %vm1388_vm0, %v1787_v47  ;;  %v1756_v50 = vpack.c.bf16 %v1083_v48, %v1083_v48  ;;  %v1788_v51 = vpack.c.bf16 %v1115_v49, %v1115_v49 }
 0x162   : > { %v877_v52 = vpop.f32.mrb[32].mxu0  ;;  %v1005_v53 = vpop.f32.mrb[32].mxu1 }
 0x163   : > { %1404 = vst.msk [vmem:[%s2329_s19 + $0x3c] sm:$0xf] %vm1388_vm0, %v1756_v50  ;;  %1436 = vst.msk [vmem:[%s2329_s19 + $0xbc] sm:$0xf] %vm1388_vm0, %v1788_v51  ;;  %v878_v54 = vadd.f32 %v2321_v17, %v877_v52  ;;  %v1006_v55 = vadd.f32 %v2321_v17, %v1005_v53  ;;  %v879_v56 = vpop.f32.mrb[33].mxu0  ;;  %v1007_v57 = vpop.f32.mrb[33].mxu1 }
 0x164   : > { %v880_v58 = vpop.f32.mrb[34].mxu0  ;;  %v1008_v59 = vpop.f32.mrb[34].mxu1 }
 0x165   : > { %v1084_v60 = vmax.f32 %v878_v54, 0.0  ;;  %v1116_v61 = vmax.f32 %v1006_v55, 0.0  ;;  %v881_v62 = vadd.f32 %v2321_v17, %v880_v58  ;;  %v1009_v63 = vadd.f32 %v2321_v17, %v1008_v59  ;;  %v882_v0 = vpop.f32.mrb[35].mxu0  ;;  %v1010_v1 = vpop.f32.mrb[35].mxu1 }
 0x167   : > { %v1757_v2 = vpack.c.bf16 %v1084_v60, %v1084_v60  ;;  %v1789_v3 = vpack.c.bf16 %v1116_v61, %v1116_v61  ;;  %v1085_v4 = vmax.f32 %v881_v62, 0.0  ;;  %v1117_v5 = vmax.f32 %v1009_v63, 0.0 }
 0x169   : > { %1405 = vst.msk [vmem:[%s2329_s19 + $0x40] sm:$0xf] %vm1388_vm0, %v1757_v2  ;;  %1437 = vst.msk [vmem:[%s2329_s19 + $0xc0] sm:$0xf] %vm1388_vm0, %v1789_v3  ;;  %v1758_v6 = vpack.c.bf16 %v1085_v4, %v1085_v4  ;;  %v1790_v7 = vpack.c.bf16 %v1117_v5, %v1117_v5 }
 0x16a   : > { %v885_v8 = vpop.f32.mrb[36].mxu0  ;;  %v1013_v9 = vpop.f32.mrb[36].mxu1 }
 0x16b   : > { %1406 = vst.msk [vmem:[%s2329_s19 + $0x44] sm:$0xf] %vm1388_vm0, %v1758_v6  ;;  %1438 = vst.msk [vmem:[%s2329_s19 + $0xc4] sm:$0xf] %vm1388_vm0, %v1790_v7  ;;  %v886_v10 = vadd.f32 %v2321_v17, %v885_v8  ;;  %v1014_v11 = vadd.f32 %v2321_v17, %v1013_v9  ;;  %v887_v12 = vpop.f32.mrb[37].mxu0  ;;  %v1015_v13 = vpop.f32.mrb[37].mxu1 }
 0x16c   : > { %v888_v14 = vpop.f32.mrb[38].mxu0  ;;  %v1016_v15 = vpop.f32.mrb[38].mxu1 }
 0x16d   : > { %v1086_v16 = vmax.f32 %v886_v10, 0.0  ;;  %v1118_v18 = vmax.f32 %v1014_v11, 0.0  ;;  %v889_v19 = vadd.f32 %v2321_v17, %v888_v14  ;;  %v1017_v20 = vadd.f32 %v2321_v17, %v1016_v15  ;;  %v890_v21 = vpop.f32.mrb[39].mxu0  ;;  %v1018_v22 = vpop.f32.mrb[39].mxu1 }
 0x16f   : > { %v1759_v23 = vpack.c.bf16 %v1086_v16, %v1086_v16  ;;  %v1791_v24 = vpack.c.bf16 %v1118_v18, %v1118_v18  ;;  %v1087_v25 = vmax.f32 %v889_v19, 0.0  ;;  %v1119_v26 = vmax.f32 %v1017_v20, 0.0 }
 0x171   : > { %1407 = vst.msk [vmem:[%s2329_s19 + $0x48] sm:$0xf] %vm1388_vm0, %v1759_v23  ;;  %1439 = vst.msk [vmem:[%s2329_s19 + $0xc8] sm:$0xf] %vm1388_vm0, %v1791_v24  ;;  %v1760_v27 = vpack.c.bf16 %v1087_v25, %v1087_v25  ;;  %v1792_v28 = vpack.c.bf16 %v1119_v26, %v1119_v26 }
 0x172   : > { %v893_v29 = vpop.f32.mrb[40].mxu0  ;;  %v1021_v30 = vpop.f32.mrb[40].mxu1 }
 0x173   : > { %1408 = vst.msk [vmem:[%s2329_s19 + $0x4c] sm:$0xf] %vm1388_vm0, %v1760_v27  ;;  %1440 = vst.msk [vmem:[%s2329_s19 + $0xcc] sm:$0xf] %vm1388_vm0, %v1792_v28  ;;  %v894_v31 = vadd.f32 %v2321_v17, %v893_v29  ;;  %v1022_v32 = vadd.f32 %v2321_v17, %v1021_v30  ;;  %v895_v33 = vpop.f32.mrb[41].mxu0  ;;  %v1023_v34 = vpop.f32.mrb[41].mxu1 }
 0x174   : > { %v896_v35 = vpop.f32.mrb[42].mxu0  ;;  %v1024_v36 = vpop.f32.mrb[42].mxu1 }
 0x175   : > { %v1088_v37 = vmax.f32 %v894_v31, 0.0  ;;  %v1120_v38 = vmax.f32 %v1022_v32, 0.0  ;;  %v897_v39 = vadd.f32 %v2321_v17, %v896_v35  ;;  %v1025_v40 = vadd.f32 %v2321_v17, %v1024_v36  ;;  %v898_v41 = vpop.f32.mrb[43].mxu0  ;;  %v1026_v42 = vpop.f32.mrb[43].mxu1 }
 0x177   : > { %v1761_v43 = vpack.c.bf16 %v1088_v37, %v1088_v37  ;;  %v1793_v44 = vpack.c.bf16 %v1120_v38, %v1120_v38  ;;  %v1089_v45 = vmax.f32 %v897_v39, 0.0  ;;  %v1121_v46 = vmax.f32 %v1025_v40, 0.0 }
 0x179   : > { %1409 = vst.msk [vmem:[%s2329_s19 + $0x50] sm:$0xf] %vm1388_vm0, %v1761_v43  ;;  %1441 = vst.msk [vmem:[%s2329_s19 + $0xd0] sm:$0xf] %vm1388_vm0, %v1793_v44  ;;  %v1762_v47 = vpack.c.bf16 %v1089_v45, %v1089_v45  ;;  %v1794_v48 = vpack.c.bf16 %v1121_v46, %v1121_v46 }
 0x17a   : > { %v901_v49 = vpop.f32.mrb[44].mxu0  ;;  %v1029_v50 = vpop.f32.mrb[44].mxu1 }
 0x17b   : > { %1410 = vst.msk [vmem:[%s2329_s19 + $0x54] sm:$0xf] %vm1388_vm0, %v1762_v47  ;;  %1442 = vst.msk [vmem:[%s2329_s19 + $0xd4] sm:$0xf] %vm1388_vm0, %v1794_v48  ;;  %v902_v51 = vadd.f32 %v2321_v17, %v901_v49  ;;  %v1030_v52 = vadd.f32 %v2321_v17, %v1029_v50  ;;  %v903_v53 = vpop.f32.mrb[45].mxu0  ;;  %v1031_v54 = vpop.f32.mrb[45].mxu1 }
 0x17c   : > { %v904_v55 = vpop.f32.mrb[46].mxu0  ;;  %v1032_v56 = vpop.f32.mrb[46].mxu1 }
 0x17d   : > { %v1090_v57 = vmax.f32 %v902_v51, 0.0  ;;  %v1122_v58 = vmax.f32 %v1030_v52, 0.0  ;;  %v905_v59 = vadd.f32 %v2321_v17, %v904_v55  ;;  %v1033_v60 = vadd.f32 %v2321_v17, %v1032_v56  ;;  %v906_v61 = vpop.f32.mrb[47].mxu0  ;;  %v1034_v62 = vpop.f32.mrb[47].mxu1 }
 0x17f   : > { %v1763_v63 = vpack.c.bf16 %v1090_v57, %v1090_v57  ;;  %v1795_v0 = vpack.c.bf16 %v1122_v58, %v1122_v58  ;;  %v1091_v1 = vmax.f32 %v905_v59, 0.0  ;;  %v1123_v2 = vmax.f32 %v1033_v60, 0.0 }
 0x181   : > { %1411 = vst.msk [vmem:[%s2329_s19 + $0x58] sm:$0xf] %vm1388_vm0, %v1763_v63  ;;  %1443 = vst.msk [vmem:[%s2329_s19 + $0xd8] sm:$0xf] %vm1388_vm0, %v1795_v0  ;;  %v1764_v3 = vpack.c.bf16 %v1091_v1, %v1091_v1  ;;  %v1796_v4 = vpack.c.bf16 %v1123_v2, %v1123_v2 }
 0x182   : > { %v909_v5 = vpop.f32.mrb[48].mxu0  ;;  %v1037_v6 = vpop.f32.mrb[48].mxu1 }
 0x183   : > { %1412 = vst.msk [vmem:[%s2329_s19 + $0x5c] sm:$0xf] %vm1388_vm0, %v1764_v3  ;;  %1444 = vst.msk [vmem:[%s2329_s19 + $0xdc] sm:$0xf] %vm1388_vm0, %v1796_v4  ;;  %v910_v7 = vadd.f32 %v2321_v17, %v909_v5  ;;  %v1038_v8 = vadd.f32 %v2321_v17, %v1037_v6  ;;  %v911_v9 = vpop.f32.mrb[49].mxu0  ;;  %v1039_v10 = vpop.f32.mrb[49].mxu1 }
 0x184   : > { %v912_v11 = vpop.f32.mrb[50].mxu0  ;;  %v1040_v12 = vpop.f32.mrb[50].mxu1 }
 0x185   : > { %v1092_v13 = vmax.f32 %v910_v7, 0.0  ;;  %v1124_v14 = vmax.f32 %v1038_v8, 0.0  ;;  %v913_v15 = vadd.f32 %v2321_v17, %v912_v11  ;;  %v1041_v16 = vadd.f32 %v2321_v17, %v1040_v12  ;;  %v914_v18 = vpop.f32.mrb[51].mxu0  ;;  %v1042_v19 = vpop.f32.mrb[51].mxu1 }
 0x187   : > { %v1765_v20 = vpack.c.bf16 %v1092_v13, %v1092_v13  ;;  %v1797_v21 = vpack.c.bf16 %v1124_v14, %v1124_v14  ;;  %v1093_v22 = vmax.f32 %v913_v15, 0.0  ;;  %v1125_v23 = vmax.f32 %v1041_v16, 0.0 }
 0x189   : > { %1413 = vst.msk [vmem:[%s2329_s19 + $0x60] sm:$0xf] %vm1388_vm0, %v1765_v20  ;;  %1445 = vst.msk [vmem:[%s2329_s19 + $0xe0] sm:$0xf] %vm1388_vm0, %v1797_v21  ;;  %v1766_v24 = vpack.c.bf16 %v1093_v22, %v1093_v22  ;;  %v1798_v25 = vpack.c.bf16 %v1125_v23, %v1125_v23 }
 0x18a   : > { %v917_v26 = vpop.f32.mrb[52].mxu0  ;;  %v1045_v27 = vpop.f32.mrb[52].mxu1 }
 0x18b   : > { %1414 = vst.msk [vmem:[%s2329_s19 + $0x64] sm:$0xf] %vm1388_vm0, %v1766_v24  ;;  %1446 = vst.msk [vmem:[%s2329_s19 + $0xe4] sm:$0xf] %vm1388_vm0, %v1798_v25  ;;  %v918_v28 = vadd.f32 %v2321_v17, %v917_v26  ;;  %v1046_v29 = vadd.f32 %v2321_v17, %v1045_v27  ;;  %v919_v30 = vpop.f32.mrb[53].mxu0  ;;  %v1047_v31 = vpop.f32.mrb[53].mxu1 }
 0x18c   : > { %v920_v32 = vpop.f32.mrb[54].mxu0  ;;  %v1048_v33 = vpop.f32.mrb[54].mxu1 }
 0x18d   : > { %v1094_v34 = vmax.f32 %v918_v28, 0.0  ;;  %v1126_v35 = vmax.f32 %v1046_v29, 0.0  ;;  %v921_v36 = vadd.f32 %v2321_v17, %v920_v32  ;;  %v1049_v37 = vadd.f32 %v2321_v17, %v1048_v33  ;;  %v922_v38 = vpop.f32.mrb[55].mxu0  ;;  %v1050_v39 = vpop.f32.mrb[55].mxu1 }
 0x18f   : > { %v1767_v40 = vpack.c.bf16 %v1094_v34, %v1094_v34  ;;  %v1799_v41 = vpack.c.bf16 %v1126_v35, %v1126_v35  ;;  %v1095_v42 = vmax.f32 %v921_v36, 0.0  ;;  %v1127_v43 = vmax.f32 %v1049_v37, 0.0 }
 0x191   : > { %1415 = vst.msk [vmem:[%s2329_s19 + $0x68] sm:$0xf] %vm1388_vm0, %v1767_v40  ;;  %1447 = vst.msk [vmem:[%s2329_s19 + $0xe8] sm:$0xf] %vm1388_vm0, %v1799_v41  ;;  %v1768_v44 = vpack.c.bf16 %v1095_v42, %v1095_v42  ;;  %v1800_v45 = vpack.c.bf16 %v1127_v43, %v1127_v43 }
 0x192   : > { %v925_v46 = vpop.f32.mrb[56].mxu0  ;;  %v1053_v47 = vpop.f32.mrb[56].mxu1 }
 0x193   : > { %1416 = vst.msk [vmem:[%s2329_s19 + $0x6c] sm:$0xf] %vm1388_vm0, %v1768_v44  ;;  %1448 = vst.msk [vmem:[%s2329_s19 + $0xec] sm:$0xf] %vm1388_vm0, %v1800_v45  ;;  %v926_v48 = vadd.f32 %v2321_v17, %v925_v46  ;;  %v1054_v49 = vadd.f32 %v2321_v17, %v1053_v47  ;;  %v927_v50 = vpop.f32.mrb[57].mxu0  ;;  %v1055_v51 = vpop.f32.mrb[57].mxu1 }
 0x194   : > { %v928_v52 = vpop.f32.mrb[58].mxu0  ;;  %v1056_v53 = vpop.f32.mrb[58].mxu1 }
 0x195   : > { %v1096_v54 = vmax.f32 %v926_v48, 0.0  ;;  %v1128_v55 = vmax.f32 %v1054_v49, 0.0  ;;  %v929_v56 = vadd.f32 %v2321_v17, %v928_v52  ;;  %v1057_v57 = vadd.f32 %v2321_v17, %v1056_v53  ;;  %v930_v58 = vpop.f32.mrb[59].mxu0  ;;  %v1058_v59 = vpop.f32.mrb[59].mxu1 }
 0x197   : > { %v1769_v60 = vpack.c.bf16 %v1096_v54, %v1096_v54  ;;  %v1801_v61 = vpack.c.bf16 %v1128_v55, %v1128_v55  ;;  %v1097_v62 = vmax.f32 %v929_v56, 0.0  ;;  %v1129_v63 = vmax.f32 %v1057_v57, 0.0 }
 0x199   : > { %1417 = vst.msk [vmem:[%s2329_s19 + $0x70] sm:$0xf] %vm1388_vm0, %v1769_v60  ;;  %1449 = vst.msk [vmem:[%s2329_s19 + $0xf0] sm:$0xf] %vm1388_vm0, %v1801_v61  ;;  %v1770_v0 = vpack.c.bf16 %v1097_v62, %v1097_v62  ;;  %v1802_v1 = vpack.c.bf16 %v1129_v63, %v1129_v63 }
 0x19a   : > { %v933_v2 = vpop.f32.mrb[60].mxu0  ;;  %v1061_v3 = vpop.f32.mrb[60].mxu1 }
 0x19b   : > { %1418 = vst.msk [vmem:[%s2329_s19 + $0x74] sm:$0xf] %vm1388_vm0, %v1770_v0  ;;  %1450 = vst.msk [vmem:[%s2329_s19 + $0xf4] sm:$0xf] %vm1388_vm0, %v1802_v1  ;;  %v934_v4 = vadd.f32 %v2321_v17, %v933_v2  ;;  %v1062_v5 = vadd.f32 %v2321_v17, %v1061_v3  ;;  %v935_v6 = vpop.f32.mrb[61].mxu0  ;;  %v1063_v7 = vpop.f32.mrb[61].mxu1 }
 0x19c   : > { %v936_v8 = vpop.f32.mrb[62].mxu0  ;;  %v1064_v9 = vpop.f32.mrb[62].mxu1 }
 0x19d   : > { %v1098_v10 = vmax.f32 %v934_v4, 0.0  ;;  %v1130_v11 = vmax.f32 %v1062_v5, 0.0  ;;  %v937_v12 = vadd.f32 %v2321_v17, %v936_v8  ;;  %v1065_v13 = vadd.f32 %v2321_v17, %v1064_v9  ;;  %v938_v14 = vpop.f32.mrb[63].mxu0  ;;  %v1066_v15 = vpop.f32.mrb[63].mxu1 }
 0x19f   : > { %v1771_v16 = vpack.c.bf16 %v1098_v10, %v1098_v10  ;;  %v1803_v18 = vpack.c.bf16 %v1130_v11, %v1130_v11  ;;  %v1099_v19 = vmax.f32 %v937_v12, 0.0  ;;  %v1131_v20 = vmax.f32 %v1065_v13, 0.0 }
 0x1a1   : > { %1419 = vst.msk [vmem:[%s2329_s19 + $0x78] sm:$0xf] %vm1388_vm0, %v1771_v16  ;;  %1451 = vst.msk [vmem:[%s2329_s19 + $0xf8] sm:$0xf] %vm1388_vm0, %v1803_v18  ;;  %v1772_v17 = vpack.c.bf16 %v1099_v19, %v1099_v19  ;;  %v1804_v21 = vpack.c.bf16 %v1131_v20, %v1131_v20 }
 0x1a3   : > { %1420 = vst.msk [vmem:[%s2329_s19 + $0x7c] sm:$0xf] %vm1388_vm0, %v1772_v17  ;;  %1452 = vst.msk [vmem:[%s2329_s19 + $0xfc] sm:$0xf] %vm1388_vm0, %v1804_v21 }
 0x1a4   : > { %2021 = shalt.err (!%p2018_p5)
}
 0x1a5   : > { %s2022_s27 = scalar_lea.hbm %s2516_s11, 4096  ;;  %s2026_s30 = scalar_lea.hbm %s2579_s3, 16384 }
 0x1a6   : > { %p2023_p6 = scmp.ne.s32.totalorder %s2516_s11, %s2022_s27  ;;  %p2027_p10 = scmp.lt.u32.totalorder %s2516_s11, %s2579_s3 }
 0x1a7   : > { %p2028_p11 = scmp.lt.u32.totalorder %s2026_s30, %s2022_s27  ;;  %p2030_p13 = scmp.lt.u32.totalorder %s2022_s27, %s2516_s11 }
 0x1a8   : > { %p2024_p7 = pnand %p2023_p6, %p2152_p4 }
 0x1a9   : > { %p2029_p12 = por %p2028_p11, %p2027_p10 }
 0x1aa   : > { %p2025_p9 = pneg %p2024_p7 }
 0x1ab   : > { %p2031_p0 = por %p2030_p13, %p2029_p12 }
 0x1ad   : > { %p2032_p1 = pnand %p2031_p0, %p2025_p9 }
 0x1af   : > { %2035 = shalt.err (!%p2032_p1)
}
 0x1b0   : > { %s2090_s6 = smov 64   ;;  %s2091_s19 = smov 4  }
 0x1b1   : > { %1838 = dma.vmem_to_hbm [thread:$0]  (%p2152_p4), %s2518_s8, 4096, %s2516_s11, %s2530_s15, %s2090_s6, %s2090_s6, %s2091_s19  }
 0x1b2 PF: > { %p1844_p2 = scmp.ge.s32.totalorder %s2086_s17, 2  ;;  %s1483_s7 = sand.u32 1, %s2066_s12  }
 0x1b3   : > { %s1484_s9 = scalar_lea.sflag [#allocation3], %s1483_s7 }
 0x1b4   : > { %p1841_p3 = pnand %p1844_p2, %p2159_p8 }
 0x1b6   : > { %2061 = dma.done.wait (!%p1841_p3), %s1484_s9, 4096  }
 0x1b7   : > { %2063 = vsyncadd (!%p1841_p3), %s1484_s9, 4294963200  ;;  %s16_s17 = sadd.s32 1, %s2086_s17   ;;  %s2582_s12 = smov %s2070_s13 }
 0x1b8   : > { %p13_p5 = scmp.ge.s32.totalorder %s16_s17, 6   ;;  %s2583_s13 = smov %s2074_s14 }
 0x1b9   : > { %s2584_s14 = smov %s2165_s25  ;;  %s2585_s15 = smov %s2082_s16 }
 0x1ba   : > { %s2586_s16 = smov %s2588_s20  ;;  %15 = sbr.rel (!%p13_p5) target bundleno = 4 (0x4), region = 73 }
 0x1c1   :  { %1489 = vsyncpa [#allocation3], 1 }
 0x1c2   :  { %1491 = vsyncpa [#allocation3 + $0x1], 1 }

</bundles_post_ra>
